<compile_context>
chip_gen: v6e
topology: v6e:2x2x1
jax: 0.10.0
libtpu: 0.0.40
codegen_flags: <defaults>
</compile_context>

<pallas_src>
import functools
import math

import jax
import jax.numpy as jnp
from jax.experimental import pallas as pl
from jax.experimental.pallas import tpu as pltpu

LANE = 128  # TPU vreg lane width


# ----------------------------------------------------------------------------
# Kernel
# ----------------------------------------------------------------------------
def _fused_mlp_kernel(*refs, num_layers: int, compute_dtype):
    """Fused MLP over one (tm, K0) row tile.

    refs = (x_ref, w0_ref, b0_ref, w1_ref, b1_ref, ..., o_ref)

      x_ref : (tm, K0)   compute_dtype tile of the flattened input
      wi_ref: (K_i, N_i) compute_dtype, pre-transposed weight (in, out)
      bi_ref: (1,  N_i)  float32 bias row
      o_ref : (tm, N_pad) output tile (lane-dense N_pad)

    The layer loop is a Python for-loop: it is unrolled at trace time, so the
    intermediate activation lives purely in VMEM/vregs (compiler-managed) and
    never touches HBM.
    """
    x_ref = refs[0]
    o_ref = refs[-1]

    h = x_ref[...]
    for i in range(num_layers):
        w_ref = refs[1 + 2 * i]
        b_ref = refs[2 + 2 * i]
        # MXU matmul: bf16 (or compute_dtype) inputs, f32 accumulation.
        y = jnp.dot(h.astype(compute_dtype), w_ref[...],
                    preferred_element_type=jnp.float32)
        y = y + b_ref[...]                     # f32 bias, broadcast over rows
        if i < num_layers - 1:
            y = jnp.maximum(y, 0.0)            # ReLU on all but the last layer
        h = y
    o_ref[...] = h.astype(o_ref.dtype)


# ----------------------------------------------------------------------------
# Wrapper
# ----------------------------------------------------------------------------
def fused_mlp(x2d, kernel_params, *, tm=512,
              compute_dtype=jnp.bfloat16, out_dtype=jnp.float32):
    """Runs the fused MLP kernel on a flattened (M, K0) input.

    kernel_params: list of (w_t, b2) with w_t (in, out) in compute_dtype and
                   b2 (1, out) in float32; the final layer is already
                   lane-padded (out dim multiple of 128).
    Returns (M, N_pad) in out_dtype (caller slices off the padding).
    """
    M, K0 = x2d.shape
    num_layers = len(kernel_params)
    n_out_pad = kernel_params[-1][0].shape[1]

    # Row-tile size: keep block second-to-last dim either == M or a multiple of 8.
    tm = min(tm, M)
    if tm != M and tm % 8 != 0:
        tm = max(8, (tm // 8) * 8)
    grid = (pl.cdiv(M, tm),)

    # Halve activation DMA bytes by shipping the input already in compute_dtype.
    x_in = x2d.astype(compute_dtype)

    in_specs = [pl.BlockSpec((tm, K0), lambda i: (i, 0))]
    operands = [x_in]
    flops = 0
    bytes_accessed = x_in.size * x_in.dtype.itemsize
    for (w_t, b2) in kernel_params:
        k_i, n_i = w_t.shape
        # Constant index_map -> weight/bias stay VMEM-resident across the grid.
        in_specs.append(pl.BlockSpec((k_i, n_i), lambda i: (0, 0)))
        in_specs.append(pl.BlockSpec((1, n_i), lambda i: (0, 0)))
        operands.extend([w_t, b2])
        flops += 2 * M * k_i * n_i
        bytes_accessed += (w_t.size * w_t.dtype.itemsize
                           + b2.size * b2.dtype.itemsize)
    bytes_accessed += M * n_out_pad * jnp.dtype(out_dtype).itemsize

    out_specs = pl.BlockSpec((tm, n_out_pad), lambda i: (i, 0))
    out_shape = jax.ShapeDtypeStruct((M, n_out_pad), out_dtype)

    # Rough VMEM working-set estimate: resident params (double-buffered by the
    # pipeliner) + double-buffered in/out tiles + f32 intermediates.
    c_isz = jnp.dtype(compute_dtype).itemsize
    resident = sum(w.size * w.dtype.itemsize + b.size * b.dtype.itemsize
                   for w, b in kernel_params)
    widths = [K0] + [w.shape[1] for w, _ in kernel_params]
    vmem_needed = (2 * resident
                   + 2 * tm * K0 * c_isz
                   + 2 * tm * n_out_pad * jnp.dtype(out_dtype).itemsize
                   + 4 * tm * max(widths) * 4)
    cp_kwargs = dict(dimension_semantics=("parallel",))
    if vmem_needed > 32 * 1024 * 1024:
        # Raise the scoped limit if the working set is big (stay < 64 MiB so the
        # same config also fits v7x's smaller physical VMEM).
        cp_kwargs["vmem_limit_bytes"] = min(int(vmem_needed * 5 // 4),
                                            60 * 1024 * 1024)

    kernel = functools.partial(_fused_mlp_kernel,
                               num_layers=num_layers,
                               compute_dtype=compute_dtype)

    return pl.pallas_call(
        kernel,
        out_shape=out_shape,
        grid_spec=pltpu.PrefetchScalarGridSpec(
            num_scalar_prefetch=0,
            grid=grid,
            in_specs=in_specs,
            out_specs=out_specs,
        ),
        compiler_params=pltpu.CompilerParams(**cp_kwargs),
        cost_estimate=pl.CostEstimate(flops=int(flops),
                                      transcendentals=0,
                                      bytes_accessed=int(bytes_accessed)),
    )(*operands)


# ----------------------------------------------------------------------------
# Parameters (PyTorch layout) + one-time kernel-layout preparation
# ----------------------------------------------------------------------------
def init_mlp_params(key, input_dim, hidden_dim, output_dim, num_layers):
    """Deterministic init matching nn.Linear layer shapes.

    Layer i: weight (out_i, in_i), bias (out_i,), float32 (PyTorch layout).
    """
    h = [hidden_dim] * (num_layers - 1)
    in_dims = [input_dim] + h
    out_dims = h + [output_dim]
    params = []
    for n, k in zip(in_dims, out_dims):
        key, wkey, bkey = jax.random.split(key, 3)
        bound = 1.0 / math.sqrt(n)
        w = jax.random.uniform(wkey, (k, n), jnp.float32, -bound, bound)
        b = jax.random.uniform(bkey, (k,), jnp.float32, -bound, bound)
        params.append((w, b))
    return params


def prepare_kernel_params(params, *, compute_dtype=jnp.bfloat16):
    """One-time transform of PyTorch-layout params into kernel layout.

    * transpose weights to (in, out) (so no per-forward w.T copies),
    * cast weights to compute_dtype (bf16 MXU inputs, half the weight DMA),
    * keep biases in f32 as (1, out) rows,
    * zero-pad the FINAL layer's output dim up to a multiple of 128 so the
      kernel's output store is lane-dense (padding columns are exactly 0).
    """
    num_layers = len(params)
    kparams = []
    for i, (w, b) in enumerate(params):
        w_t = jnp.asarray(w).T               # (in, out)
        b2 = jnp.asarray(b).reshape(1, -1)   # (1, out)
        if i == num_layers - 1:
            n = w_t.shape[1]
            n_pad = ((n + LANE - 1) // LANE) * LANE
            if n_pad != n:
                w_t = jnp.pad(w_t, ((0, 0), (0, n_pad - n)))
                b2 = jnp.pad(b2, ((0, 0), (0, n_pad - n)))
        kparams.append((w_t.astype(compute_dtype), b2.astype(jnp.float32)))
    return kparams


def mlp_forward(x, kernel_params, output_dim, *, tm=512,
                compute_dtype=jnp.bfloat16):
    """Forward pass: relu(linear) for all but last layer, linear for last.

    x: (..., input_dim) -> (..., output_dim)
    """
    orig_shape = x.shape
    m = 1
    for d in orig_shape[:-1]:
        m *= d
    x2d = x.reshape(m, orig_shape[-1])
    y = fused_mlp(x2d, kernel_params, tm=tm,
                  compute_dtype=compute_dtype, out_dtype=x.dtype)
    y = y[:, :output_dim]  # drop lane padding of the final layer
    return y.reshape(*orig_shape[:-1], output_dim)


# ----------------------------------------------------------------------------
# Pure-JAX references
# ----------------------------------------------------------------------------
def mlp_reference(x, params, compute_dtype=jnp.float32):
    """Reference; with compute_dtype=bf16 it mimics the kernel's numerics."""
    num_layers = len(params)
    h = x
    for i, (w, b) in enumerate(params):
        y = jnp.dot(h.astype(compute_dtype), w.T.astype(compute_dtype),
                    preferred_element_type=jnp.float32) + b
        h = jnp.maximum(y, 0.0) if i < num_layers - 1 else y
    return h


if __name__ == "__main__":
    key = jax.random.PRNGKey(0)
    kx, kp = jax.random.split(key)

    batch, seq = 2, 8
    input_dim, hidden_dim, output_dim, num_layers = 32, 32, 4, 3

    x = jax.random.normal(kx, (batch, seq, input_dim), jnp.float32)
    params = init_mlp_params(kp, input_dim, hidden_dim, output_dim, num_layers)
    kparams = prepare_kernel_params(params, compute_dtype=jnp.bfloat16)

    out = mlp_forward(x, kparams, output_dim, tm=256,
                      compute_dtype=jnp.bfloat16)
    out = jax.block_until_ready(out)

    ref_f32 = mlp_reference(x, params)                              # module semantics (f32)
    ref_bf16 = mlp_reference(x, params, compute_dtype=jnp.bfloat16)  # kernel numerics

    assert out.shape == (batch, seq, output_dim), out.shape
    # Tight check vs. a reference using the same bf16-input / f32-accum numerics.
    assert jnp.allclose(out, ref_bf16, atol=1e-3, rtol=1e-3), "mismatch vs bf16 reference"
    # Loose check vs. the pure-f32 reference (bf16 MXU inputs => ~1e-2 abs error).
    assert jnp.allclose(out, ref_f32, atol=5e-2, rtol=5e-2), "mismatch vs f32 reference"

    print("KERNEL_OK")
</pallas_src>

<mosaic_0001>
module attributes {stable_mosaic.version = 11 : i64} {
  func.func @_fused_mlp_kernel(%arg0: i32, %arg1: memref<16x32xbf16, #tpu.memory_space<vmem>>, %arg2: memref<32x32xbf16, #tpu.memory_space<vmem>>, %arg3: memref<1x32xf32, #tpu.memory_space<vmem>>, %arg4: memref<32x32xbf16, #tpu.memory_space<vmem>>, %arg5: memref<1x32xf32, #tpu.memory_space<vmem>>, %arg6: memref<32x128xbf16, #tpu.memory_space<vmem>>, %arg7: memref<1x128xf32, #tpu.memory_space<vmem>>, %arg8: memref<16x128xf32, #tpu.memory_space<vmem>>) attributes {dimension_semantics = [#tpu.dimension_semantics<parallel>], iteration_bounds = array<i64: 1>, scalar_prefetch = 0 : i64, scratch_operands = 0 : i64, tpu.core_type = #tpu.core_type<tc>, window_params = [{transform_indices = @transform_0, window_bounds = array<i64: 16, 32>}, {pipeline_mode = #tpu.pipeline_mode<synchronous>, transform_indices = @transform_1, window_bounds = array<i64: 32, 32>}, {pipeline_mode = #tpu.pipeline_mode<synchronous>, transform_indices = @transform_2, window_bounds = array<i64: 1, 32>}, {pipeline_mode = #tpu.pipeline_mode<synchronous>, transform_indices = @transform_3, window_bounds = array<i64: 32, 32>}, {pipeline_mode = #tpu.pipeline_mode<synchronous>, transform_indices = @transform_4, window_bounds = array<i64: 1, 32>}, {pipeline_mode = #tpu.pipeline_mode<synchronous>, transform_indices = @transform_5, window_bounds = array<i64: 32, 128>}, {pipeline_mode = #tpu.pipeline_mode<synchronous>, transform_indices = @transform_6, window_bounds = array<i64: 1, 128>}, {transform_indices = @transform_7, window_bounds = array<i64: 16, 128>}]} {
    %c0 = arith.constant 0 : index
    %c0_0 = arith.constant 0 : index
    %0 = vector.load %arg1[%c0, %c0_0] : memref<16x32xbf16, #tpu.memory_space<vmem>>, vector<16x32xbf16>
    %c0_1 = arith.constant 0 : index
    %c0_2 = arith.constant 0 : index
    %1 = vector.load %arg2[%c0_1, %c0_2] : memref<32x32xbf16, #tpu.memory_space<vmem>>, vector<32x32xbf16>
    %cst = arith.constant dense<0.000000e+00> : vector<16x32xf32>
    %2 = tpu.matmul %0, %1, %cst {dimension_numbers = #tpu.dot_dimension_numbers<[1], [0], [0], [1], [0, 0, 1, 1], [], []>} : vector<16x32xbf16>, vector<32x32xbf16>, vector<16x32xf32> -> vector<16x32xf32>
    %c0_3 = arith.constant 0 : index
    %c0_4 = arith.constant 0 : index
    %3 = vector.load %arg3[%c0_3, %c0_4] : memref<1x32xf32, #tpu.memory_space<vmem>>, vector<1x32xf32>
    %4 = vector.broadcast %3 : vector<1x32xf32> to vector<16x32xf32>
    %5 = arith.addf %2, %4 : vector<16x32xf32>
    %cst_5 = arith.constant 0.000000e+00 : f32
    %6 = vector.broadcast %cst_5 : f32 to vector<16x32xf32>
    %7 = arith.maximumf %5, %6 : vector<16x32xf32>
    %8 = arith.truncf %7 : vector<16x32xf32> to vector<16x32xbf16>
    %c0_6 = arith.constant 0 : index
    %c0_7 = arith.constant 0 : index
    %9 = vector.load %arg4[%c0_6, %c0_7] : memref<32x32xbf16, #tpu.memory_space<vmem>>, vector<32x32xbf16>
    %cst_8 = arith.constant dense<0.000000e+00> : vector<16x32xf32>
    %10 = tpu.matmul %8, %9, %cst_8 {dimension_numbers = #tpu.dot_dimension_numbers<[1], [0], [0], [1], [0, 0, 1, 1], [], []>} : vector<16x32xbf16>, vector<32x32xbf16>, vector<16x32xf32> -> vector<16x32xf32>
    %c0_9 = arith.constant 0 : index
    %c0_10 = arith.constant 0 : index
    %11 = vector.load %arg5[%c0_9, %c0_10] : memref<1x32xf32, #tpu.memory_space<vmem>>, vector<1x32xf32>
    %12 = vector.broadcast %11 : vector<1x32xf32> to vector<16x32xf32>
    %13 = arith.addf %10, %12 : vector<16x32xf32>
    %cst_11 = arith.constant 0.000000e+00 : f32
    %14 = vector.broadcast %cst_11 : f32 to vector<16x32xf32>
    %15 = arith.maximumf %13, %14 : vector<16x32xf32>
    %16 = arith.truncf %15 : vector<16x32xf32> to vector<16x32xbf16>
    %c0_12 = arith.constant 0 : index
    %c0_13 = arith.constant 0 : index
    %17 = vector.load %arg6[%c0_12, %c0_13] : memref<32x128xbf16, #tpu.memory_space<vmem>>, vector<32x128xbf16>
    %cst_14 = arith.constant dense<0.000000e+00> : vector<16x128xf32>
    %18 = tpu.matmul %16, %17, %cst_14 {dimension_numbers = #tpu.dot_dimension_numbers<[1], [0], [0], [1], [0, 0, 1, 1], [], []>} : vector<16x32xbf16>, vector<32x128xbf16>, vector<16x128xf32> -> vector<16x128xf32>
    %c0_15 = arith.constant 0 : index
    %c0_16 = arith.constant 0 : index
    %19 = vector.load %arg7[%c0_15, %c0_16] : memref<1x128xf32, #tpu.memory_space<vmem>>, vector<1x128xf32>
    %20 = vector.broadcast %19 : vector<1x128xf32> to vector<16x128xf32>
    %21 = arith.addf %18, %20 : vector<16x128xf32>
    %c0_17 = arith.constant 0 : index
    %c0_18 = arith.constant 0 : index
    %22 = vector.load %arg8[%c0_17, %c0_18] : memref<16x128xf32, #tpu.memory_space<vmem>>, vector<16x128xf32>
    tpu.vector_store %arg8[%c0_17, %c0_18], %21 {strides = array<i32>} : memref<16x128xf32, #tpu.memory_space<vmem>>, vector<16x128xf32>,
    return
  }
  func.func @transform_0(%arg0: i32) -> (i32, i32) {
    %c0_i32 = arith.constant 0 : i32
    %c0_i32_0 = arith.constant 0 : i32
    return %arg0, %c0_i32 : i32, i32
  }
  func.func @transform_1(%arg0: i32) -> (i32, i32) {
    %c0_i32 = arith.constant 0 : i32
    %c0_i32_0 = arith.constant 0 : i32
    %c0_i32_1 = arith.constant 0 : i32
    return %c0_i32, %c0_i32_0 : i32, i32
  }
  func.func @transform_2(%arg0: i32) -> (i32, i32) {
    %c0_i32 = arith.constant 0 : i32
    %c0_i32_0 = arith.constant 0 : i32
    %c0_i32_1 = arith.constant 0 : i32
    return %c0_i32, %c0_i32_0 : i32, i32
  }
  func.func @transform_3(%arg0: i32) -> (i32, i32) {
    %c0_i32 = arith.constant 0 : i32
    %c0_i32_0 = arith.constant 0 : i32
    %c0_i32_1 = arith.constant 0 : i32
    return %c0_i32, %c0_i32_0 : i32, i32
  }
  func.func @transform_4(%arg0: i32) -> (i32, i32) {
    %c0_i32 = arith.constant 0 : i32
    %c0_i32_0 = arith.constant 0 : i32
    %c0_i32_1 = arith.constant 0 : i32
    return %c0_i32, %c0_i32_0 : i32, i32
  }
  func.func @transform_5(%arg0: i32) -> (i32, i32) {
    %c0_i32 = arith.constant 0 : i32
    %c0_i32_0 = arith.constant 0 : i32
    %c0_i32_1 = arith.constant 0 : i32
    return %c0_i32, %c0_i32_0 : i32, i32
  }
  func.func @transform_6(%arg0: i32) -> (i32, i32) {
    %c0_i32 = arith.constant 0 : i32
    %c0_i32_0 = arith.constant 0 : i32
    %c0_i32_1 = arith.constant 0 : i32
    return %c0_i32, %c0_i32_0 : i32, i32
  }
  func.func @transform_7(%arg0: i32) -> (i32, i32) {
    %c0_i32 = arith.constant 0 : i32
    %c0_i32_0 = arith.constant 0 : i32
    return %arg0, %c0_i32 : i32, i32
  }
}

</mosaic_0001>

<bundles_post_ra>
// kernel: tpu_custom_call.1
= control target key start
LH: loop header
LB: loop body
LE: loop exit
PB: predicated region body
PF: predicated region fallthrough
CT: control target
= control target key end

     0   :  { %12 = vsyncpa [#allocation3], 0  ;;  %s581_s0 = inlined_call_operand.hbm [shape: bf16[16,32], index: 0, kind: input, shape index: {}]   ;;  %s582_s1 = inlined_call_operand.hbm [shape: bf16[32,32], index: 1, kind: input, shape index: {}]   ;;  %s583_s2 = inlined_call_operand.vmem [shape: f32[1,32], index: 2, kind: input, shape index: {}]   ;;  %s584_s3 = inlined_call_operand.hbm [shape: bf16[32,32], index: 3, kind: input, shape index: {}]   ;;  %s585_s4 = inlined_call_operand.vmem [shape: f32[1,32], index: 4, kind: input, shape index: {}]   ;;  %s586_s5 = inlined_call_operand.hbm [shape: bf16[32,128], index: 5, kind: input, shape index: {}]   ;;  %s587_s6 = inlined_call_operand.vmem [shape: f32[1,128], index: 6, kind: input, shape index: {}]   ;;  %s588_s7 = inlined_call_operand.hbm [shape: f32[16,128], index: 7, kind: output, shape index: {}]  }
   0x1   :  { %13 = vsyncpa [#allocation6], 0 }
   0x2   :  { %14 = vsyncpa [#allocation9], 0 }
   0x3   :  { %15 = vsyncpa [#allocation4], 0  ;;  %s491_s24 = smov [#allocation5]   ;;  %s492_s26 = smov [#allocation2]  }
   0x4   :  { %s33_s25 = sshll.u32 %s491_s24, 4  ;;  %s21_s27 = sshll.u32 %s492_s26, 4  ;;  %s34_s25 = int_to_ptr.vmem [resolvable:$true] %s33_s25  ;;  %s22_s27 = int_to_ptr.vmem [resolvable:$true] %s21_s27 }
   0x5   :  { %s391_s28 = scalar_lea.vmem %s34_s25, 256  ;;  %p396_p1 = scmp.lt.s32.totalorder %s34_s25, %s34_s25 }
   0x6   :  { %p392_p0 = scmp.ne.s32.totalorder %s34_s25, %s391_s28  ;;  %p397_p2 = scmp.lt.s32.totalorder %s391_s28, %s391_s28 }
   0x8   :  { %p398_p3 = por %p397_p2, %p396_p1 }
   0xa   :  { %p399_p4 = pnand %p398_p3, %p392_p0 }
   0xc   :  { %402 = shalt.err (!%p399_p4)
}
   0xd   :  { %s493_s29 = smov 64   ;;  %s494_s30 = smov 4  }
   0xe   :  { %39 = dma.hbm_to_vmem [thread:$0]  %s582_s1, 256, %s34_s25, [#allocation6], %s493_s29, %s493_s29, %s494_s30  }
   0xf   :  { %s411_s10 = scalar_lea.vmem %s22_s27, 128  ;;  %p416_p6 = scmp.lt.s32.totalorder %s22_s27, %s22_s27 }
  0x10   :  { %p412_p5 = scmp.ne.s32.totalorder %s22_s27, %s411_s10  ;;  %p417_p7 = scmp.lt.s32.totalorder %s411_s10, %s411_s10 }
  0x12   :  { %p418_p8 = por %p417_p7, %p416_p6 }
  0x14   :  { %p419_p9 = pnand %p418_p8, %p412_p5 }
  0x16   :  { %422 = shalt.err (!%p419_p9)
}
  0x17   :  { %27 = dma.hbm_to_vmem [thread:$0]  %s581_s0, 128, %s22_s27, [#allocation3], %s493_s29, %s493_s29, %s494_s30  }
  0x18   :  { %s495_s13 = smov [#allocation7]   ;;  %s496_s15 = smov [#allocation8]  }
  0x19   :  { %s47_s14 = sshll.u32 %s495_s13, 4  ;;  %s61_s16 = sshll.u32 %s496_s15, 4  ;;  %s48_s14 = int_to_ptr.vmem [resolvable:$true] %s47_s14  ;;  %s62_s16 = int_to_ptr.vmem [resolvable:$true] %s61_s16 }
  0x1a   :  { %s431_s1 = scalar_lea.vmem %s48_s14, 256  ;;  %p436_p11 = scmp.lt.s32.totalorder %s48_s14, %s48_s14 }
  0x1b   :  { %p432_p10 = scmp.ne.s32.totalorder %s48_s14, %s431_s1  ;;  %p437_p12 = scmp.lt.s32.totalorder %s431_s1, %s431_s1 }
  0x1d   :  { %p438_p13 = por %p437_p12, %p436_p11 }
  0x1f   :  { %p439_p0 = pnand %p438_p13, %p432_p10 }
  0x21   :  { %442 = shalt.err (!%p439_p0)
}
  0x22   :  { %53 = dma.hbm_to_vmem [thread:$0]  %s584_s3, 256, %s48_s14, [#allocation6], %s493_s29, %s493_s29, %s494_s30  }
  0x23   :  { %s451_s0 = scalar_lea.vmem %s62_s16, 256  ;;  %p456_p2 = scmp.lt.s32.totalorder %s62_s16, %s62_s16 }
  0x24   :  { %p452_p1 = scmp.ne.s32.totalorder %s62_s16, %s451_s0  ;;  %p457_p3 = scmp.lt.s32.totalorder %s451_s0, %s451_s0 }
  0x26   :  { %p458_p4 = por %p457_p3, %p456_p2 }
  0x28   :  { %p459_p5 = pnand %p458_p4, %p452_p1 }
  0x2a   :  { %462 = shalt.err (!%p459_p5)
}
  0x2b   :  { %67 = dma.hbm_to_vmem [thread:$0]  %s586_s5, 256, %s62_s16, [#allocation9], %s493_s29, %s493_s29, %s494_s30  }
  0x2c   :  { %483 = dma.done.wait [#allocation3], 128  }
  0x2d   :  { %484 = vsyncadd [#allocation3], 4294967168 }
  0x2e   :  { %485 = dma.done.wait [#allocation6], 512  }
  0x2f   :  { %486 = vsyncadd [#allocation6], 4294966784 }
  0x30   :  { %487 = dma.done.wait [#allocation9], 256  }
  0x31   :  { %488 = vsyncadd [#allocation9], 4294967040  ;;  %v497_v0 = vmov 0.0   ;;  %vm498_vm0 = vmmov 0   ;;  %v376_v1 = vld [vmem:[#allocation5 + $0x8] sm:$0xff]   ;;  %v377_v2 = vld [vmem:[#allocation5] sm:$0xff]  }
  0x32   :  { %341 = vmatprep.subr.bf16.mxu0 %v497_v0  ;;  %345 = vmatprep.mubr.msk.bf16.mxu0 %vm498_vm0, %v497_v0  ;;  %v378_v3 = vld [vmem:[#allocation2] sm:$0xff]   ;;  %vm113_vm1 = vcmask 261120   ;;  %v380_v5 = vld [vmem:[#allocation7] sm:$0xff]   ;;  %v381_v16 = vld [vmem:[#allocation8 + $0x8] sm:$0xff]   ;;  %s499_s24 = smov [#allocation10]  }
  0x33   :  { %349 = vmatprep.subr.bf16.mxu1 %v497_v0  ;;  %353 = vmatprep.mubr.msk.bf16.mxu1 %vm498_vm0, %v497_v0  ;;  %v379_v4 = vld [vmem:[#allocation7 + $0x8] sm:$0xff]   ;;  %v382_v17 = vld [vmem:[#allocation8] sm:$0xff]   ;;  %s305_s25 = sshll.u32 %s499_s24, 4  ;;  %s306_s25 = int_to_ptr.vmem [resolvable:$true] %s305_s25 }
  0x34   :  { %342 = vmatpush3.bf16.msra.mxu0 %v376_v1  ;;  %350 = vmatpush3.bf16.msra.mxu1 %v379_v4  ;;  %v319_v6 = vld [vmem:[%s583_s2] ss:$0 sm:$0xff]  ;;  %p468_p7 = scmp.lt.s32.totalorder %s306_s25, %s306_s25 }
  0x35   :  { %343 = vmatprep.subr.bf16.mxu0 %v497_v0  ;;  %351 = vmatprep.subr.bf16.mxu1 %v497_v0  ;;  %v324_v18 = vld [vmem:[%s585_s4] ss:$0 sm:$0xff]  ;;  %s463_s4 = scalar_lea.vmem %s306_s25, 256 }
  0x36   :  { %v328_v28 = vld [vmem:[%s587_s6] ss:$0 sm:$0xff]  ;;  %p464_p6 = scmp.ne.s32.totalorder %s306_s25, %s463_s4  ;;  %p469_p8 = scmp.lt.s32.totalorder %s463_s4, %s463_s4 }
  0x38   :  { %344 = vmatpush3.bf16.msra.mxu0 %v377_v2  ;;  %352 = vmatpush3.bf16.msra.mxu1 %v380_v5  ;;  %p470_p9 = por %p469_p8, %p468_p7 }
  0x39   :  { %357 = vmatprep.subr.bf16.mxu0 %v497_v0 }
  0x3a   :  { %p471_p10 = pnand %p470_p9, %p464_p6 }
  0x3b   :  { %346 = vmatmul.mubr.msk.bf16.vlgmr.msra.gmra.mxu0 %vm113_vm1, %v378_v3 }
  0x3c   :  { %361 = vmatprep.mubr.msk.bf16.mxu0 %vm498_vm0, %v497_v0  ;;  %358 = vmatpush3.bf16.msra.mxu0 %v381_v16 }
  0x3d   :  { %359 = vmatprep.subr.bf16.mxu0 %v497_v0 }
  0x40   :  { %360 = vmatpush3.bf16.msra.mxu0 %v382_v17 }
  0xfb   :  { %v151_v7 = vpop.f32.mrf.mxu0 }
  0xfc   :  { %v152_v9 = vadd.f32 %v319_v6, %v151_v7 }
  0xfd   :  { %v347_v8 = vpop.f32.mrf.mxu0 }
  0xfe   :  { %v158_v13 = vmax.f32 %v152_v9, 0.0 }
  0xff   :  { %v154_v10 = vpop.f32.mrf.mxu0 }
 0x100   :  { %v155_v11 = vadd.f32 %v319_v6, %v154_v10 }
 0x101   :  { %v348_v12 = vpop.f32.mrf.mxu0 }
 0x102   :  { %v159_v14 = vmax.f32 %v155_v11, 0.0 }
 0x104   :  { %v160_v15 = vpack.c.bf16 %v159_v14, %v158_v13 }
 0x106   :  { %354 = vmatmul.mubr.msk.bf16.vlgmr.msra.gmra.mxu1 %vm113_vm1, %v160_v15 }
 0x1c6   :  { %v221_v19 = vpop.f32.mrf.mxu1 }
 0x1c7   :  { %v222_v21 = vadd.f32 %v324_v18, %v221_v19 }
 0x1c8   :  { %v355_v20 = vpop.f32.mrf.mxu1 }
 0x1c9   :  { %v228_v25 = vmax.f32 %v222_v21, 0.0 }
 0x1ca   :  { %v224_v22 = vpop.f32.mrf.mxu1 }
 0x1cb   :  { %v225_v23 = vadd.f32 %v324_v18, %v224_v22 }
 0x1cc   :  { %v356_v24 = vpop.f32.mrf.mxu1 }
 0x1cd   :  { %v229_v26 = vmax.f32 %v225_v23, 0.0 }
 0x1cf   :  { %v230_v27 = vpack.c.bf16 %v229_v26, %v228_v25 }
 0x1d1   :  { %362 = vmatmul.mubr.msk.bf16.vlgmr.msra.gmra.mxu0 %vm113_vm1, %v230_v27 }
 0x291   :  { %v291_v29 = vpop.f32.mrf.mxu0 }
 0x292   :  { %v292_v30 = vadd.f32 %v328_v28, %v291_v29 }
 0x293   :  { %v363_v31 = vpop.f32.mrf.mxu0 }
 0x294   :  { %298 = vst [vmem:[#allocation10] sm:$0xff] %v292_v30 }
 0x295   :  { %v294_v32 = vpop.f32.mrf.mxu0 }
 0x296   :  { %v295_v33 = vadd.f32 %v328_v28, %v294_v32 }
 0x297   :  { %v364_v34 = vpop.f32.mrf.mxu0 }
 0x298   :  { %299 = vst [vmem:[#allocation10 + $0x8] sm:$0xff] %v295_v33 }
 0x299   :  { %474 = shalt.err (!%p471_p10)
}
 0x29a   :  { %s500_s26 = smov 128   ;;  %s501_s6 = smov 8  }
 0x29b   :  { %311 = dma.vmem_to_hbm [thread:$0]  %s306_s25, 256, %s588_s7, [#allocation4], %s500_s26, %s500_s26, %s501_s6  }
 0x29c   :  { %489 = dma.done.wait [#allocation4], 256  }
 0x29d   :  { %490 = vsyncadd [#allocation4], 4294967040 }
 0x29e   :  { %315 = vsyncpa [#allocation3], 1 }
 0x29f   :  { %316 = vsyncpa [#allocation6], 1 }
 0x2a0   :  { %317 = vsyncpa [#allocation9], 1 }
 0x2a1   :  { %318 = vsyncpa [#allocation4], 1 }

</bundles_post_ra>
